<compile_context>
chip_gen: v7x
topology: tpu7x:2x2x1
jax: 0.10.0
libtpu: 0.0.40
codegen_flags: <defaults>
</compile_context>

<pallas_src>
import jax
import jax.numpy as jnp
from jax.experimental import pallas as pl
from jax.experimental.pallas import tpu as pltpu


def pairnn_kernel(
    x_ref,                   # fused input  [x0 | x1]            (TB, F0+F1)
    w01_ref,                 # blockdiag(w_sn0, w_sn1)           (F0+F1, 2)
    wa_ref, ba_ref,          # seq[0]: Linear(2, H)  (bias pre-folded w/ heads)
    wb_ref, bb_ref,          # seq[1]: Linear(H, H)
    wc_ref, bc_ref,          # seq[3]: Linear(H, 1)
    o_ref,                   # output                            (TB, 1)
):
    # --- fused subnetwork heads: one MXU push yields both scalars ---------
    s = jnp.dot(x_ref[...], w01_ref[...],
                preferred_element_type=jnp.float32)              # (TB, 2)
    s0 = s[:, 0:1]
    s1 = s[:, 1:2]

    # --- torch.cat((s0, s1), 1) followed by Linear(2, H) ------------------
    # K=2 matmul expanded into two VPU broadcast multiplies; head biases are
    # already folded into ba_ref (ba_eff) by the wrapper.
    h = s0 * wa_ref[0:1, :] + s1 * wa_ref[1:2, :] + ba_ref[...]  # (TB, H)

    # --- Linear(H, H) ------------------------------------------------------
    h = jnp.dot(h, wb_ref[...],
                preferred_element_type=jnp.float32) + bb_ref[...]  # (TB, H)

    # Dropout(p) -> identity in eval mode.
    # TODO(synk): training-mode dropout (pltpu.prng_random_bits mask) not emitted.

    # --- Linear(H, 1) ------------------------------------------------------
    y = jnp.dot(h, wc_ref[...],
                preferred_element_type=jnp.float32) + bc_ref[...]  # (TB, 1)

    o_ref[...] = y.astype(o_ref.dtype)


def pair_nn_forward(x0, x1, params, tile_b=None):
    """Fused PairNN forward. Returns shape (B,) like torch.squeeze(..., 1)."""
    B, f0 = x0.shape
    _, f1 = x1.shape
    F = f0 + f1
    H = params["w_seq0"].shape[1]

    # ---- offline parameter fusion (tiny, done once per call) -------------
    w01 = jnp.zeros((F, 2), jnp.float32)
    w01 = w01.at[:f0, 0:1].set(params["w_sn0"])
    w01 = w01.at[f0:, 1:2].set(params["w_sn1"])
    ba_eff = (params["b_seq0"]
              + params["b_sn0"] * params["w_seq0"][0:1, :]
              + params["b_sn1"] * params["w_seq0"][1:2, :])        # (1, H)

    # ---- batch tiling: large tiles amortize per-step overhead ------------
    if tile_b is None:
        # up to 4096 rows per tile (f32, F=32 -> 512 KiB/tile input, ~1 MiB
        # double-buffered); round small batches up to the sublane multiple.
        tile_b = min(4096, max(8, ((B + 7) // 8) * 8))
    n_tiles = pl.cdiv(B, tile_b)
    B_pad = n_tiles * tile_b

    xcat = jnp.concatenate([x0, x1], axis=1)                       # (B, F)
    if B_pad != B:
        xcat = jnp.pad(xcat, ((0, B_pad - B), (0, 0)))

    row_spec = pl.BlockSpec((tile_b, F), lambda i: (i, 0))
    out_spec = pl.BlockSpec((tile_b, 1), lambda i: (i, 0))

    def resident(shape):
        # weights stay resident in VMEM across all batch tiles
        return pl.BlockSpec(shape, lambda i: (0, 0))

    out = pl.pallas_call(
        pairnn_kernel,
        out_shape=jax.ShapeDtypeStruct((B_pad, 1), jnp.float32),
        grid=(n_tiles,),
        in_specs=[
            row_spec,            # xcat
            resident((F, 2)),    # w01
            resident((2, H)),    # w_seq0
            resident((1, H)),    # ba_eff
            resident((H, H)),    # w_seq1
            resident((1, H)),    # b_seq1
            resident((H, 1)),    # w_seq3
            resident((1, 1)),    # b_seq3
        ],
        out_specs=out_spec,
        compiler_params=pltpu.CompilerParams(
            dimension_semantics=("parallel",),      # split across TCs on v7x
            vmem_limit_bytes=32 * 1024 * 1024,      # explicit, plenty of headroom
        ),
    )(xcat, w01, params["w_seq0"], ba_eff,
      params["w_seq1"], params["b_seq1"],
      params["w_seq3"], params["b_seq3"])

    return out[:B, 0]


def init_params(key, f0, f1, hidden):
    ks = jax.random.split(key, 10)

    def lin(kw, kb, fan_in, fan_out):
        # uniform(-1/sqrt(fan_in), 1/sqrt(fan_in)), like torch.nn.Linear default
        bound = 1.0 / jnp.sqrt(jnp.float32(fan_in))
        w = jax.random.uniform(kw, (fan_in, fan_out), jnp.float32, -bound, bound)
        b = jax.random.uniform(kb, (1, fan_out), jnp.float32, -bound, bound)
        return w, b

    p = {}
    p["w_sn0"], p["b_sn0"] = lin(ks[0], ks[1], f0, 1)
    p["w_sn1"], p["b_sn1"] = lin(ks[2], ks[3], f1, 1)
    p["w_seq0"], p["b_seq0"] = lin(ks[4], ks[5], 2, hidden)
    p["w_seq1"], p["b_seq1"] = lin(ks[6], ks[7], hidden, hidden)
    p["w_seq3"], p["b_seq3"] = lin(ks[8], ks[9], hidden, 1)
    return p


def pair_nn_reference(x0, x1, p):
    """Plain-JAX reference for sanity checking (mirrors the PyTorch module)."""
    s0 = x0 @ p["w_sn0"] + p["b_sn0"]
    s1 = x1 @ p["w_sn1"] + p["b_sn1"]
    feat = jnp.concatenate([s0, s1], axis=1)           # (B, 2)
    h = feat @ p["w_seq0"] + p["b_seq0"]
    h = h @ p["w_seq1"] + p["b_seq1"]
    y = h @ p["w_seq3"] + p["b_seq3"]
    return jnp.squeeze(y, axis=1)


if __name__ == "__main__":
    B, F0, F1, HIDDEN = 8, 16, 16, 32
    key = jax.random.PRNGKey(0)
    k_x0, k_x1, k_p = jax.random.split(key, 3)

    x0 = jax.random.normal(k_x0, (B, F0), jnp.float32)   # input0 = (x0,)
    x1 = jax.random.normal(k_x1, (B, F1), jnp.float32)   # input1 = x1
    params = init_params(k_p, F0, F1, HIDDEN)

    out = pair_nn_forward(x0, x1, params)
    out = jax.block_until_ready(out)

    ref = pair_nn_reference(x0, x1, params)
    assert out.shape == (B,), out.shape
    assert jnp.allclose(out, ref, atol=1e-5, rtol=1e-5), (out, ref)

    print("KERNEL_OK")
</pallas_src>

<mosaic_0001>
module attributes {stable_mosaic.version = 11 : i64} {
  func.func @pairnn_kernel(%arg0: i32, %arg1: memref<8x32xf32, #tpu.memory_space<vmem>>, %arg2: memref<32x2xf32, #tpu.memory_space<vmem>>, %arg3: memref<2x32xf32, #tpu.memory_space<vmem>>, %arg4: memref<1x32xf32, #tpu.memory_space<vmem>>, %arg5: memref<32x32xf32, #tpu.memory_space<vmem>>, %arg6: memref<1x32xf32, #tpu.memory_space<vmem>>, %arg7: memref<32x1xf32, #tpu.memory_space<vmem>>, %arg8: memref<1x1xf32, #tpu.memory_space<vmem>>, %arg9: memref<8x1xf32, #tpu.memory_space<vmem>>) attributes {dimension_semantics = [#tpu.dimension_semantics<parallel>], iteration_bounds = array<i64: 1>, scalar_prefetch = 0 : i64, scratch_operands = 0 : i64, tpu.core_type = #tpu.core_type<tc>, window_params = [{transform_indices = @transform_0, window_bounds = array<i64: 8, 32>}, {pipeline_mode = #tpu.pipeline_mode<synchronous>, transform_indices = @transform_1, window_bounds = array<i64: 32, 2>}, {pipeline_mode = #tpu.pipeline_mode<synchronous>, transform_indices = @transform_2, window_bounds = array<i64: 2, 32>}, {pipeline_mode = #tpu.pipeline_mode<synchronous>, transform_indices = @transform_3, window_bounds = array<i64: 1, 32>}, {pipeline_mode = #tpu.pipeline_mode<synchronous>, transform_indices = @transform_4, window_bounds = array<i64: 32, 32>}, {pipeline_mode = #tpu.pipeline_mode<synchronous>, transform_indices = @transform_5, window_bounds = array<i64: 1, 32>}, {pipeline_mode = #tpu.pipeline_mode<synchronous>, transform_indices = @transform_6, window_bounds = array<i64: 32, 1>}, {pipeline_mode = #tpu.pipeline_mode<synchronous>, transform_indices = @transform_7, window_bounds = array<i64: 1, 1>}, {transform_indices = @transform_8, window_bounds = array<i64: 8, 1>}]} {
    %c0 = arith.constant 0 : index
    %c0_0 = arith.constant 0 : index
    %0 = vector.load %arg1[%c0, %c0_0] : memref<8x32xf32, #tpu.memory_space<vmem>>, vector<8x32xf32>
    %c0_1 = arith.constant 0 : index
    %c0_2 = arith.constant 0 : index
    %1 = vector.load %arg2[%c0_1, %c0_2] : memref<32x2xf32, #tpu.memory_space<vmem>>, vector<32x2xf32>
    %cst = arith.constant dense<0.000000e+00> : vector<8x2xf32>
    %2 = tpu.matmul %0, %1, %cst {dimension_numbers = #tpu.dot_dimension_numbers<[1], [0], [0], [1], [0, 0, 1, 1], [], []>} : vector<8x32xf32>, vector<32x2xf32>, vector<8x2xf32> -> vector<8x2xf32>
    %3 = vector.extract_strided_slice %2 {offsets = [0, 0], sizes = [8, 1], strides = [1, 1]} : vector<8x2xf32> to vector<8x1xf32>
    %4 = vector.extract_strided_slice %2 {offsets = [0, 1], sizes = [8, 1], strides = [1, 1]} : vector<8x2xf32> to vector<8x1xf32>
    %c0_3 = arith.constant 0 : index
    %c0_4 = arith.constant 0 : index
    %5 = vector.load %arg3[%c0_3, %c0_4] : memref<2x32xf32, #tpu.memory_space<vmem>>, vector<1x32xf32>
    %6 = vector.broadcast %3 : vector<8x1xf32> to vector<8x32xf32>
    %7 = vector.broadcast %5 : vector<1x32xf32> to vector<8x32xf32>
    %8 = arith.mulf %6, %7 : vector<8x32xf32>
    %c1 = arith.constant 1 : index
    %c0_5 = arith.constant 0 : index
    %9 = vector.load %arg3[%c1, %c0_5] : memref<2x32xf32, #tpu.memory_space<vmem>>, vector<1x32xf32>
    %10 = vector.broadcast %4 : vector<8x1xf32> to vector<8x32xf32>
    %11 = vector.broadcast %9 : vector<1x32xf32> to vector<8x32xf32>
    %12 = arith.mulf %10, %11 : vector<8x32xf32>
    %13 = arith.addf %8, %12 : vector<8x32xf32>
    %c0_6 = arith.constant 0 : index
    %c0_7 = arith.constant 0 : index
    %14 = vector.load %arg4[%c0_6, %c0_7] : memref<1x32xf32, #tpu.memory_space<vmem>>, vector<1x32xf32>
    %15 = vector.broadcast %14 : vector<1x32xf32> to vector<8x32xf32>
    %16 = arith.addf %13, %15 : vector<8x32xf32>
    %c0_8 = arith.constant 0 : index
    %c0_9 = arith.constant 0 : index
    %17 = vector.load %arg5[%c0_8, %c0_9] : memref<32x32xf32, #tpu.memory_space<vmem>>, vector<32x32xf32>
    %cst_10 = arith.constant dense<0.000000e+00> : vector<8x32xf32>
    %18 = tpu.matmul %16, %17, %cst_10 {dimension_numbers = #tpu.dot_dimension_numbers<[1], [0], [0], [1], [0, 0, 1, 1], [], []>} : vector<8x32xf32>, vector<32x32xf32>, vector<8x32xf32> -> vector<8x32xf32>
    %c0_11 = arith.constant 0 : index
    %c0_12 = arith.constant 0 : index
    %19 = vector.load %arg6[%c0_11, %c0_12] : memref<1x32xf32, #tpu.memory_space<vmem>>, vector<1x32xf32>
    %20 = vector.broadcast %19 : vector<1x32xf32> to vector<8x32xf32>
    %21 = arith.addf %18, %20 : vector<8x32xf32>
    %c0_13 = arith.constant 0 : index
    %c0_14 = arith.constant 0 : index
    %22 = vector.load %arg7[%c0_13, %c0_14] : memref<32x1xf32, #tpu.memory_space<vmem>>, vector<32x1xf32>
    %cst_15 = arith.constant dense<0.000000e+00> : vector<8x1xf32>
    %23 = tpu.matmul %21, %22, %cst_15 {dimension_numbers = #tpu.dot_dimension_numbers<[1], [0], [0], [1], [0, 0, 1, 1], [], []>} : vector<8x32xf32>, vector<32x1xf32>, vector<8x1xf32> -> vector<8x1xf32>
    %c0_16 = arith.constant 0 : index
    %c0_17 = arith.constant 0 : index
    %24 = vector.load %arg8[%c0_16, %c0_17] : memref<1x1xf32, #tpu.memory_space<vmem>>, vector<1x1xf32>
    %25 = vector.broadcast %24 : vector<1x1xf32> to vector<8x1xf32>
    %26 = arith.addf %23, %25 : vector<8x1xf32>
    %c0_18 = arith.constant 0 : index
    %c0_19 = arith.constant 0 : index
    %27 = vector.load %arg9[%c0_18, %c0_19] : memref<8x1xf32, #tpu.memory_space<vmem>>, vector<8x1xf32>
    tpu.vector_store %arg9[%c0_18, %c0_19], %26 {strides = array<i32>} : memref<8x1xf32, #tpu.memory_space<vmem>>, vector<8x1xf32>,
    return
  }
  func.func @transform_0(%arg0: i32) -> (i32, i32) {
    %c0_i32 = arith.constant 0 : i32
    %c0_i32_0 = arith.constant 0 : i32
    return %arg0, %c0_i32 : i32, i32
  }
  func.func @transform_1(%arg0: i32) -> (i32, i32) {
    %c0_i32 = arith.constant 0 : i32
    %c0_i32_0 = arith.constant 0 : i32
    %c0_i32_1 = arith.constant 0 : i32
    return %c0_i32, %c0_i32_0 : i32, i32
  }
  func.func @transform_2(%arg0: i32) -> (i32, i32) {
    %c0_i32 = arith.constant 0 : i32
    %c0_i32_0 = arith.constant 0 : i32
    %c0_i32_1 = arith.constant 0 : i32
    return %c0_i32, %c0_i32_0 : i32, i32
  }
  func.func @transform_3(%arg0: i32) -> (i32, i32) {
    %c0_i32 = arith.constant 0 : i32
    %c0_i32_0 = arith.constant 0 : i32
    %c0_i32_1 = arith.constant 0 : i32
    return %c0_i32, %c0_i32_0 : i32, i32
  }
  func.func @transform_4(%arg0: i32) -> (i32, i32) {
    %c0_i32 = arith.constant 0 : i32
    %c0_i32_0 = arith.constant 0 : i32
    %c0_i32_1 = arith.constant 0 : i32
    return %c0_i32, %c0_i32_0 : i32, i32
  }
  func.func @transform_5(%arg0: i32) -> (i32, i32) {
    %c0_i32 = arith.constant 0 : i32
    %c0_i32_0 = arith.constant 0 : i32
    %c0_i32_1 = arith.constant 0 : i32
    return %c0_i32, %c0_i32_0 : i32, i32
  }
  func.func @transform_6(%arg0: i32) -> (i32, i32) {
    %c0_i32 = arith.constant 0 : i32
    %c0_i32_0 = arith.constant 0 : i32
    %c0_i32_1 = arith.constant 0 : i32
    return %c0_i32, %c0_i32_0 : i32, i32
  }
  func.func @transform_7(%arg0: i32) -> (i32, i32) {
    %c0_i32 = arith.constant 0 : i32
    %c0_i32_0 = arith.constant 0 : i32
    %c0_i32_1 = arith.constant 0 : i32
    return %c0_i32, %c0_i32_0 : i32, i32
  }
  func.func @transform_8(%arg0: i32) -> (i32, i32) {
    %c0_i32 = arith.constant 0 : i32
    %c0_i32_0 = arith.constant 0 : i32
    return %arg0, %c0_i32 : i32, i32
  }
}

</mosaic_0001>

<bundles_post_ra>
// kernel: tpu_custom_call.1
= control target key start
LH: loop header
LB: loop body
LE: loop exit
PB: predicated region body
PF: predicated region fallthrough
CT: control target
= control target key end

     0   :  { %v395_v0 = vmov 0.0|0.0   ;;  %vm396_vm0 = vmmov 0   ;;  %v397_v4 = vmov 0.0   ;;  %v398_v7 = vmov 0   ;;  %s508_s1 = inlined_call_operand.vmem [shape: f32[32,2], index: 1, kind: input, shape index: {}]   ;;  %s509_s0 = inlined_call_operand.vmem [shape: f32[8,32], index: 0, kind: input, shape index: {}]   ;;  %s510_s4 = inlined_call_operand.vmem [shape: f32[32,32], index: 4, kind: input, shape index: {}]   ;;  %s511_s6 = inlined_call_operand.vmem [shape: f32[32,1], index: 6, kind: input, shape index: {}]   ;;  %s512_s2 = inlined_call_operand.vmem [shape: f32[2,32], index: 2, kind: input, shape index: {}]   ;;  %s513_s3 = inlined_call_operand.vmem [shape: f32[1,32], index: 3, kind: input, shape index: {}]   ;;  %s514_s7 = inlined_call_operand.<no memory space> [shape: f32[1,1], index: 7, kind: input, shape index: {}]   ;;  %s515_s5 = inlined_call_operand.vmem [shape: f32[1,32], index: 5, kind: input, shape index: {}]   ;;  %s516_s8 = inlined_call_operand.vmem [shape: f32[8,1], index: 8, kind: output, shape index: {}]  }
   0x1   :  { %370 = vmatprep.subr.bf16.mxu0 %v395_v0  ;;  %v32_v1 = vld [vmem:[%s508_s1] sm:$0xff]  ;;  %v33_v2 = vld [vmem:[%s508_s1 + $0x8] sm:$0xff]  ;;  %v34_v3 = vld [vmem:[%s508_s1 + $0x10] sm:$0xff]  ;;  %345 = vmatprep.mubr.msk.f32.mxu0 %vm396_vm0, %v397_v4  ;;  %vm36_vm1 = vcmask 261120   ;;  %v399_v15 = vmov 1   ;;  %v13_v34 = vstv %s514_s7  ;;  %vm308_vm2 = vcmask 7168  }
   0x2   :  { %v371_v5 = vpack.c.bf16 %v33_v2, %v32_v1  ;;  %v35_v6 = vld [vmem:[%s508_s1 + $0x18] sm:$0xff]  ;;  %393 = vset.pattern.permute.xlu0 %v398_v7  ;;  %376 = vmatprep.subr.bf16.mxu1 %v395_v0  ;;  %v31_v9 = vld [vmem:[%s509_s0] sm:$0xff]  ;;  %v141_v13 = vld [vmem:[%s510_s4 + $0x8] sm:$0xff]  ;;  %14 = vst [vmem:[#allocation2] sm:$0x1] %v13_v34 }
   0x3   :  { %356 = vmatprep.mubr.msk.f32.mxu1 %vm396_vm0, %v397_v4  ;;  %v374_v8 = vpack.c.bf16 %v35_v6, %v34_v3  ;;  %v140_v12 = vld [vmem:[%s510_s4] sm:$0xff]  ;;  %v142_v16 = vld [vmem:[%s510_s4 + $0x10] sm:$0xff]  ;;  %v143_v17 = vld [vmem:[%s510_s4 + $0x18] sm:$0xff] }
   0x4   :  { %372 = vmatpush3.bf16.msra.mxu0 %v371_v5  ;;  %v377_v14 = vpack.c.bf16 %v141_v13, %v140_v12  ;;  %v380_v18 = vpack.c.bf16 %v143_v17, %v142_v16  ;;  %v224_v19 = vld [vmem:[%s511_s6] sm:$0xff]  ;;  %v225_v20 = vld [vmem:[%s511_s6 + $0x8] sm:$0xff]  ;;  %v226_v31 = vld [vmem:[%s511_s6 + $0x10] sm:$0xff] }
   0x5   :  { %373 = vmatprep.subr.bf16.mxu0 %v395_v0  ;;  %v383_v21 = vpack.c.bf16 %v225_v20, %v224_v19  ;;  %v315_v23 = vld [vmem:[%s512_s2] ss:$0 sm:$0xff]  ;;  %v316_v24 = vld [vmem:[%s512_s2 + $0x1] ss:$0 sm:$0xff]  ;;  %v227_v32 = vld [vmem:[%s511_s6 + $0x18] sm:$0xff] }
   0x6   :  { %378 = vmatpush3.bf16.msra.mxu1 %v377_v14  ;;  %v317_v28 = vld [vmem:[%s513_s3] ss:$0 sm:$0xff]  ;;  %v386_v33 = vpack.c.bf16 %v227_v32, %v226_v31 }
   0x7   :  { %379 = vmatprep.subr.bf16.mxu1 %v395_v0  ;;  %v318_v35 = vld [vmem:[%s515_s5] ss:$0 sm:$0xff] }
   0x8   :  { %375 = vmatpush3.bf16.msra.mxu0 %v374_v8 }
   0x9   :  { %382 = vmatprep.subr.bf16.mxu0 %v395_v0  ;;  %v320_v39 = vld [vmem:[#allocation2] ss:$0 sm:$0xff] }
   0xa   :  { %381 = vmatpush3.bf16.msra.mxu1 %v380_v18 }
   0xb   :  { %346 = vmatmul.mubr.msk.f32.vlgmr.msra.gmra.mrb[0].mxu0 %vm36_vm1, %v31_v9 }
   0xc   :  { %367 = vmatprep.mubr.msk.f32.mxu0 %vm396_vm0, %v397_v4  ;;  %384 = vmatpush3.bf16.msra.mxu0 %v383_v21 }
   0xd   :  { %385 = vmatprep.subr.bf16.mxu0 %v395_v0 }
  0x10   :  { %387 = vmatpush3.bf16.msra.mxu0 %v386_v33 }
  0xde   :  { %v106_v10 = vpop.f32.mrb[0].mxu0 }
  0xdf   :  { %113 = vperm.xlu0 %393, %v106_v10   ;;  %v347_v11 = vpop.f32.mrb[1].mxu0 }
  0xe3   :  { %394 = vset.pattern.permute.xlu0 %v399_v15 }
  0xe4   :  { %123 = vperm.xlu0 %394, %v106_v10  }
 0x15e   :  { %v114_v22 = vpop.permute.xlu0 %113 }
 0x15f   :  { %v120_v26 = vmul.f32 %v315_v23, %v114_v22 }
 0x163   :  { %v124_v25 = vpop.permute.xlu0 %123 }
 0x164   :  { %v130_v27 = vmul.f32 %v316_v24, %v124_v25 }
 0x166   :  { %v131_v29 = vadd.f32 %v130_v27, %v120_v26 }
 0x168   :  { %v139_v30 = vadd.f32 %v317_v28, %v131_v29 }
 0x16a   :  { %357 = vmatmul.mubr.msk.f32.vlgmr.msra.gmra.mrb[0].mxu1 %vm36_vm1, %v139_v30 }
 0x23d   :  { %v220_v36 = vpop.f32.mrb[0].mxu1 }
 0x23e   :  { %v221_v37 = vadd.f32 %v318_v35, %v220_v36  ;;  %v358_v38 = vpop.f32.mrb[1].mxu1 }
 0x240   :  { %368 = vmatmul.mubr.msk.f32.vlgmr.msra.gmra.mrb[2].mxu0 %vm36_vm1, %v221_v37 }
 0x313   :  { %v304_v40 = vpop.f32.mrb[2].mxu0 }
 0x314   :  { %v305_v41 = vadd.f32 %v320_v39, %v304_v40  ;;  %v369_v42 = vpop.f32.mrb[3].mxu0 }
 0x316   :  { %309 = vst.msk [vmem:[%s516_s8] sm:$0xff] %vm308_vm2, %v305_v41 }

</bundles_post_ra>
